<compile_context>
chip_gen: v5e
topology: v5e:2x2
jax: 0.10.0
libtpu: 0.0.40
codegen_flags: <defaults>
</compile_context>

<pallas_src>
import jax
import jax.numpy as jnp
from jax.experimental import pallas as pl
from jax.experimental.pallas import tpu as pltpu


def ncdt_kernel(stat_ref, kdiff_ref, kp_ref, sc_ref,
                wt_ref, bt_ref, w1_ref, b1_ref, w2_ref, b2_ref,
                w3_ref, b3_ref, out_ref):
    # Packed per-row scalars: col 0 = raw e_difficulty, col 1 = raw waktu.
    # Sigmoid of a (TB, 2) slab is negligible EUP work.
    sc = jax.nn.sigmoid(sc_ref[...])                     # (TB, 2)
    e_diff = sc[:, 0:1]                                  # (TB, 1)
    time_scalar = sc[:, 1:2]                             # (TB, 1)

    # Linear(1, K) is rank-1: broadcast multiply on the VPU, no MXU push.
    k_time = time_scalar * wt_ref[...] + bt_ref[...]     # (TB, K) f32

    # stat/k_diff rows come pre-activated (sigmoid applied to the tables at
    # prepare time) and in bf16; upcast to f32 on the VPU (v5e-safe).
    stat_emb = stat_ref[...].astype(jnp.float32)         # (TB, K)
    k_diff = kdiff_ref[...].astype(jnp.float32)          # (TB, K)
    kp = kp_ref[...].astype(jnp.float32)                 # (TB, K) (0/1 mask)

    x = e_diff * (stat_emb - k_time - k_diff) * kp       # (TB, K)

    # prednet MLP (dropout = identity in eval mode); real matmuls on the MXU.
    h1 = jax.nn.sigmoid(
        jnp.dot(x, w1_ref[...], preferred_element_type=jnp.float32)
        + b1_ref[...])                                   # (TB, L1)
    h2 = jax.nn.sigmoid(
        jnp.dot(h1, w2_ref[...], preferred_element_type=jnp.float32)
        + b2_ref[...])                                   # (TB, L2)

    # Linear(L2, 1) as VPU multiply + lane reduction (avoid an N=1 MXU op).
    out_ref[...] = jax.nn.sigmoid(
        jnp.sum(h2 * w3_ref[...], axis=-1, keepdims=True) + b3_ref[...])


def _round_up(n, m):
    return ((n + m - 1) // m) * m


def prepare_params(params):
    """One-time table/weight preprocessing (NOT per call).

    Pre-activates the gather tables with sigmoid (exact: elementwise sigmoid
    commutes with the row gather) and stores them as bf16 so the per-call
    gathers emit kernel-ready rows with half the HBM bytes and zero in-kernel
    EUP work for the two dominant streams.
    """
    return {
        "stat_table": jax.nn.sigmoid(params["student_emb"]).astype(jnp.bfloat16),
        "kdiff_table": jax.nn.sigmoid(params["k_difficulty"]).astype(jnp.bfloat16),
        "ediff_table": params["e_difficulty"].astype(jnp.float32),  # raw; sigmoid in-kernel
        "k_time_w": params["k_time_w"].astype(jnp.float32),         # (1, K)
        "k_time_b": params["k_time_b"].astype(jnp.float32),         # (1, K)
        "w1": params["w1"].astype(jnp.float32),                     # (K, L1)
        "b1": params["b1"].astype(jnp.float32),                     # (1, L1)
        "w2": params["w2"].astype(jnp.float32),                     # (L1, L2)
        "b2": params["b2"].astype(jnp.float32),                     # (1, L2)
        "w3_row": params["w3"].reshape(1, -1).astype(jnp.float32),  # (1, L2)
        "b3": params["b3"].astype(jnp.float32),                     # (1, 1)
    }


def net_modif_time_forward(prep, stu_id, input_exercise, input_knowledge_point, waktu):
    # --- glue: row gathers from the pre-activated / bf16 tables ---
    # TODO(synk): at very large B, fuse these gathers into the kernel DMA path
    # (manual per-row gather or allow_input_fusion) to avoid an HBM round-trip.
    stat_rows = prep["stat_table"][stu_id]               # (B, K) bf16, sigmoid'd
    kdiff_rows = prep["kdiff_table"][input_exercise]     # (B, K) bf16, sigmoid'd
    ediff_rows = prep["ediff_table"][input_exercise]     # (B, 1) f32, raw

    B, K = input_knowledge_point.shape
    L1 = prep["w1"].shape[1]
    L2 = prep["w2"].shape[1]

    # 0/1 indicator -> bf16 is exact; single cheap elementwise pass, no pad.
    kp = input_knowledge_point.astype(jnp.bfloat16)      # (B, K)

    # Pack the two per-row scalars into one stream (fewer DMA descriptors).
    scalars = jnp.concatenate(
        [ediff_rows, waktu.astype(jnp.float32)[:, None]], axis=1)  # (B, 2)

    # Batch tile: big enough to hide the ~0.35us per-grid-step overhead,
    # auto-shrunk so double-buffered streams stay well inside v7x's 64 MiB VMEM.
    TB = 2048
    stream_bytes_per_row = 3 * K * 2 + 2 * 4
    while TB > 256 and 2 * TB * stream_bytes_per_row > 24 * 1024 * 1024:
        TB //= 2
    if B <= TB:
        # single grid step; a full-batch block (or a 16-rounded partial block
        # for bf16 packing) is always legal.
        TB = B if B % 8 == 0 else _round_up(B, 16)
    grid = (pl.cdiv(B, TB),)
    # Ragged last tile: out-of-bounds rows carry garbage through the per-row
    # math; safe because there is no cross-row reduction and the partial
    # output block only writes rows < B.

    tile_map = lambda i: (i, 0)      # per-batch-tile streams / output
    const_map = lambda i: (0, 0)     # weights stay resident across grid steps

    in_specs = [
        pl.BlockSpec((TB, K), tile_map),     # stat rows (bf16, pre-sigmoid)
        pl.BlockSpec((TB, K), tile_map),     # k_difficulty rows (bf16, pre-sigmoid)
        pl.BlockSpec((TB, K), tile_map),     # knowledge-point mask (bf16)
        pl.BlockSpec((TB, 2), tile_map),     # packed [e_difficulty, waktu] (f32)
        pl.BlockSpec((1, K), const_map),     # k_time_w
        pl.BlockSpec((1, K), const_map),     # k_time_b
        pl.BlockSpec((K, L1), const_map),    # w1
        pl.BlockSpec((1, L1), const_map),    # b1
        pl.BlockSpec((L1, L2), const_map),   # w2
        pl.BlockSpec((1, L2), const_map),    # b2
        pl.BlockSpec((1, L2), const_map),    # w3 (as a row)
        pl.BlockSpec((1, 1), const_map),     # b3
    ]
    out_specs = pl.BlockSpec((TB, 1), tile_map)

    flops = 2 * B * (K * L1 + L1 * L2 + L2) + 8 * B * K
    transcendentals = B * (L1 + L2 + 3)
    bytes_accessed = (2 * 3 * B * K            # bf16 streams in
                      + 4 * 2 * B + 4 * B      # scalars in + output writeback
                      + 4 * (K * L1 + L1 * L2 + 2 * K + 2 * L2 + L1 + 1))

    out = pl.pallas_call(
        ncdt_kernel,
        out_shape=jax.ShapeDtypeStruct((B, 1), jnp.float32),
        grid=grid,
        in_specs=in_specs,
        out_specs=out_specs,
        compiler_params=pltpu.CompilerParams(
            dimension_semantics=("parallel",),
            vmem_limit_bytes=48 * 1024 * 1024,
        ),
        cost_estimate=pl.CostEstimate(
            flops=int(flops),
            transcendentals=int(transcendentals),
            bytes_accessed=int(bytes_accessed),
        ),
    )(stat_rows, kdiff_rows, kp, scalars,
      prep["k_time_w"], prep["k_time_b"],
      prep["w1"], prep["b1"], prep["w2"], prep["b2"],
      prep["w3_row"], prep["b3"])

    return out


def init_params(key, student_n, exer_n, knowledge_n,
                prednet_len1=128, prednet_len2=64):
    """Deterministic synthetic init (xavier-style normals for weights)."""
    ks = jax.random.split(key, 10)

    def xavier(k, shape):
        fan_in, fan_out = shape[0], shape[1]
        std = (2.0 / (fan_in + fan_out)) ** 0.5
        return std * jax.random.normal(k, shape, dtype=jnp.float32)

    params = {
        # embeddings (rows gathered outside the kernel)
        "student_emb": jax.random.normal(ks[0], (student_n, knowledge_n), jnp.float32),
        "k_difficulty": jax.random.normal(ks[1], (exer_n, knowledge_n), jnp.float32),
        "e_difficulty": jax.random.normal(ks[2], (exer_n, 1), jnp.float32),
        # k_time_full: Linear(1, K) -> stored [in, out] = (1, K)
        "k_time_w": xavier(ks[3], (1, knowledge_n)),
        "k_time_b": jnp.zeros((1, knowledge_n), jnp.float32),
        # prednet_full1: Linear(K, 128)
        "w1": xavier(ks[4], (knowledge_n, prednet_len1)),
        "b1": jnp.zeros((1, prednet_len1), jnp.float32),
        # prednet_full2: Linear(128, 64)
        "w2": xavier(ks[5], (prednet_len1, prednet_len2)),
        "b2": jnp.zeros((1, prednet_len2), jnp.float32),
        # prednet_full3: Linear(64, 1)
        "w3": xavier(ks[6], (prednet_len2, 1)),
        "b3": jnp.zeros((1, 1), jnp.float32),
    }
    return params


if __name__ == "__main__":
    student_n, exer_n, knowledge_n = 32, 32, 32
    batch = 8

    key = jax.random.PRNGKey(0)
    pkey, k_stu, k_exer, k_kp, k_time = jax.random.split(key, 5)

    params = init_params(pkey, student_n, exer_n, knowledge_n)
    prep = prepare_params(params)   # one-time preprocessing, not per call

    stu_id = jax.random.randint(k_stu, (batch,), 0, student_n)
    input_exercise = jax.random.randint(k_exer, (batch,), 0, exer_n)
    # knowledge-point indicator matrix (0/1), as float
    input_knowledge_point = jax.random.bernoulli(
        k_kp, 0.3, (batch, knowledge_n)).astype(jnp.float32)
    waktu = jax.random.uniform(k_time, (batch,), jnp.float32, 0.0, 100.0)

    fwd = jax.jit(net_modif_time_forward)
    out = fwd(prep, stu_id, input_exercise, input_knowledge_point, waktu)
    jax.block_until_ready(out)
    assert out.shape == (batch, 1)
    assert bool(jnp.all(jnp.isfinite(out)))
    print("KERNEL_OK")
</pallas_src>

<mosaic_0001>
module attributes {stable_mosaic.version = 11 : i64} {
  func.func @ncdt_kernel(%arg0: i32, %arg1: memref<8x32xbf16, #tpu.memory_space<vmem>>, %arg2: memref<8x32xbf16, #tpu.memory_space<vmem>>, %arg3: memref<8x32xbf16, #tpu.memory_space<vmem>>, %arg4: memref<8x2xf32, #tpu.memory_space<vmem>>, %arg5: memref<1x32xf32, #tpu.memory_space<vmem>>, %arg6: memref<1x32xf32, #tpu.memory_space<vmem>>, %arg7: memref<32x128xf32, #tpu.memory_space<vmem>>, %arg8: memref<1x128xf32, #tpu.memory_space<vmem>>, %arg9: memref<128x64xf32, #tpu.memory_space<vmem>>, %arg10: memref<1x64xf32, #tpu.memory_space<vmem>>, %arg11: memref<1x64xf32, #tpu.memory_space<vmem>>, %arg12: memref<1x1xf32, #tpu.memory_space<vmem>>, %arg13: memref<8x1xf32, #tpu.memory_space<vmem>>) attributes {dimension_semantics = [#tpu.dimension_semantics<parallel>], iteration_bounds = array<i64: 1>, scalar_prefetch = 0 : i64, scratch_operands = 0 : i64, tpu.core_type = #tpu.core_type<tc>, window_params = [{transform_indices = @transform_0, window_bounds = array<i64: 8, 32>}, {transform_indices = @transform_1, window_bounds = array<i64: 8, 32>}, {transform_indices = @transform_2, window_bounds = array<i64: 8, 32>}, {transform_indices = @transform_3, window_bounds = array<i64: 8, 2>}, {pipeline_mode = #tpu.pipeline_mode<synchronous>, transform_indices = @transform_4, window_bounds = array<i64: 1, 32>}, {pipeline_mode = #tpu.pipeline_mode<synchronous>, transform_indices = @transform_5, window_bounds = array<i64: 1, 32>}, {pipeline_mode = #tpu.pipeline_mode<synchronous>, transform_indices = @transform_6, window_bounds = array<i64: 32, 128>}, {pipeline_mode = #tpu.pipeline_mode<synchronous>, transform_indices = @transform_7, window_bounds = array<i64: 1, 128>}, {pipeline_mode = #tpu.pipeline_mode<synchronous>, transform_indices = @transform_8, window_bounds = array<i64: 128, 64>}, {pipeline_mode = #tpu.pipeline_mode<synchronous>, transform_indices = @transform_9, window_bounds = array<i64: 1, 64>}, {pipeline_mode = #tpu.pipeline_mode<synchronous>, transform_indices = @transform_10, window_bounds = array<i64: 1, 64>}, {pipeline_mode = #tpu.pipeline_mode<synchronous>, transform_indices = @transform_11, window_bounds = array<i64: 1, 1>}, {transform_indices = @transform_12, window_bounds = array<i64: 8, 1>}]} {
    %c0 = arith.constant 0 : index
    %c0_0 = arith.constant 0 : index
    %0 = vector.load %arg4[%c0, %c0_0] : memref<8x2xf32, #tpu.memory_space<vmem>>, vector<8x2xf32>
    %1 = arith.negf %0 : vector<8x2xf32>
    %2 = math.exp %1 : vector<8x2xf32>
    %cst = arith.constant 1.000000e+00 : f32
    %3 = vector.broadcast %cst : f32 to vector<8x2xf32>
    %4 = arith.addf %3, %2 : vector<8x2xf32>
    %5 = arith.divf %3, %4 : vector<8x2xf32>
    %6 = vector.extract_strided_slice %5 {offsets = [0, 0], sizes = [8, 1], strides = [1, 1]} : vector<8x2xf32> to vector<8x1xf32>
    %7 = vector.extract_strided_slice %5 {offsets = [0, 1], sizes = [8, 1], strides = [1, 1]} : vector<8x2xf32> to vector<8x1xf32>
    %c0_1 = arith.constant 0 : index
    %c0_2 = arith.constant 0 : index
    %8 = vector.load %arg5[%c0_1, %c0_2] : memref<1x32xf32, #tpu.memory_space<vmem>>, vector<1x32xf32>
    %9 = vector.broadcast %7 : vector<8x1xf32> to vector<8x32xf32>
    %10 = vector.broadcast %8 : vector<1x32xf32> to vector<8x32xf32>
    %11 = arith.mulf %9, %10 : vector<8x32xf32>
    %c0_3 = arith.constant 0 : index
    %c0_4 = arith.constant 0 : index
    %12 = vector.load %arg6[%c0_3, %c0_4] : memref<1x32xf32, #tpu.memory_space<vmem>>, vector<1x32xf32>
    %13 = vector.broadcast %12 : vector<1x32xf32> to vector<8x32xf32>
    %14 = arith.addf %11, %13 : vector<8x32xf32>
    %c0_5 = arith.constant 0 : index
    %c0_6 = arith.constant 0 : index
    %15 = vector.load %arg1[%c0_5, %c0_6] : memref<8x32xbf16, #tpu.memory_space<vmem>>, vector<8x32xbf16>
    %16 = arith.extf %15 : vector<8x32xbf16> to vector<8x32xf32>
    %c0_7 = arith.constant 0 : index
    %c0_8 = arith.constant 0 : index
    %17 = vector.load %arg2[%c0_7, %c0_8] : memref<8x32xbf16, #tpu.memory_space<vmem>>, vector<8x32xbf16>
    %18 = arith.extf %17 : vector<8x32xbf16> to vector<8x32xf32>
    %c0_9 = arith.constant 0 : index
    %c0_10 = arith.constant 0 : index
    %19 = vector.load %arg3[%c0_9, %c0_10] : memref<8x32xbf16, #tpu.memory_space<vmem>>, vector<8x32xbf16>
    %20 = arith.extf %19 : vector<8x32xbf16> to vector<8x32xf32>
    %21 = arith.subf %16, %14 : vector<8x32xf32>
    %22 = arith.subf %21, %18 : vector<8x32xf32>
    %23 = vector.broadcast %6 : vector<8x1xf32> to vector<8x32xf32>
    %24 = arith.mulf %23, %22 : vector<8x32xf32>
    %25 = arith.mulf %24, %20 : vector<8x32xf32>
    %c0_11 = arith.constant 0 : index
    %c0_12 = arith.constant 0 : index
    %26 = vector.load %arg7[%c0_11, %c0_12] : memref<32x128xf32, #tpu.memory_space<vmem>>, vector<32x128xf32>
    %cst_13 = arith.constant dense<0.000000e+00> : vector<8x128xf32>
    %27 = tpu.matmul %25, %26, %cst_13 {dimension_numbers = #tpu.dot_dimension_numbers<[1], [0], [0], [1], [0, 0, 1, 1], [], []>} : vector<8x32xf32>, vector<32x128xf32>, vector<8x128xf32> -> vector<8x128xf32>
    %c0_14 = arith.constant 0 : index
    %c0_15 = arith.constant 0 : index
    %28 = vector.load %arg8[%c0_14, %c0_15] : memref<1x128xf32, #tpu.memory_space<vmem>>, vector<1x128xf32>
    %29 = vector.broadcast %28 : vector<1x128xf32> to vector<8x128xf32>
    %30 = arith.addf %27, %29 : vector<8x128xf32>
    %31 = arith.negf %30 : vector<8x128xf32>
    %32 = math.exp %31 : vector<8x128xf32>
    %cst_16 = arith.constant 1.000000e+00 : f32
    %33 = vector.broadcast %cst_16 : f32 to vector<8x128xf32>
    %34 = arith.addf %33, %32 : vector<8x128xf32>
    %35 = arith.divf %33, %34 : vector<8x128xf32>
    %c0_17 = arith.constant 0 : index
    %c0_18 = arith.constant 0 : index
    %36 = vector.load %arg9[%c0_17, %c0_18] : memref<128x64xf32, #tpu.memory_space<vmem>>, vector<128x64xf32>
    %cst_19 = arith.constant dense<0.000000e+00> : vector<8x64xf32>
    %37 = tpu.matmul %35, %36, %cst_19 {dimension_numbers = #tpu.dot_dimension_numbers<[1], [0], [0], [1], [0, 0, 1, 1], [], []>} : vector<8x128xf32>, vector<128x64xf32>, vector<8x64xf32> -> vector<8x64xf32>
    %c0_20 = arith.constant 0 : index
    %c0_21 = arith.constant 0 : index
    %38 = vector.load %arg10[%c0_20, %c0_21] : memref<1x64xf32, #tpu.memory_space<vmem>>, vector<1x64xf32>
    %39 = vector.broadcast %38 : vector<1x64xf32> to vector<8x64xf32>
    %40 = arith.addf %37, %39 : vector<8x64xf32>
    %41 = arith.negf %40 : vector<8x64xf32>
    %42 = math.exp %41 : vector<8x64xf32>
    %cst_22 = arith.constant 1.000000e+00 : f32
    %43 = vector.broadcast %cst_22 : f32 to vector<8x64xf32>
    %44 = arith.addf %43, %42 : vector<8x64xf32>
    %45 = arith.divf %43, %44 : vector<8x64xf32>
    %c0_23 = arith.constant 0 : index
    %c0_24 = arith.constant 0 : index
    %46 = vector.load %arg11[%c0_23, %c0_24] : memref<1x64xf32, #tpu.memory_space<vmem>>, vector<1x64xf32>
    %47 = vector.broadcast %46 : vector<1x64xf32> to vector<8x64xf32>
    %48 = arith.mulf %45, %47 : vector<8x64xf32>
    %cst_25 = arith.constant dense<0.000000e+00> : vector<8xf32>
    %49 = vector.multi_reduction <add>, %48, %cst_25 [1] : vector<8x64xf32> to vector<8xf32>
    %50 = vector.shape_cast %49 : vector<8xf32> to vector<8x1xf32>
    %c0_26 = arith.constant 0 : index
    %c0_27 = arith.constant 0 : index
    %51 = vector.load %arg12[%c0_26, %c0_27] : memref<1x1xf32, #tpu.memory_space<vmem>>, vector<1x1xf32>
    %52 = vector.broadcast %51 : vector<1x1xf32> to vector<8x1xf32>
    %53 = arith.addf %50, %52 : vector<8x1xf32>
    %54 = arith.negf %53 : vector<8x1xf32>
    %55 = math.exp %54 : vector<8x1xf32>
    %cst_28 = arith.constant 1.000000e+00 : f32
    %56 = vector.broadcast %cst_28 : f32 to vector<8x1xf32>
    %57 = arith.addf %56, %55 : vector<8x1xf32>
    %58 = arith.divf %56, %57 : vector<8x1xf32>
    %c0_29 = arith.constant 0 : index
    %c0_30 = arith.constant 0 : index
    %59 = vector.load %arg13[%c0_29, %c0_30] : memref<8x1xf32, #tpu.memory_space<vmem>>, vector<8x1xf32>
    tpu.vector_store %arg13[%c0_29, %c0_30], %58 {strides = array<i32>} : memref<8x1xf32, #tpu.memory_space<vmem>>, vector<8x1xf32>,
    return
  }
  func.func @transform_0(%arg0: i32) -> (i32, i32) {
    %c0_i32 = arith.constant 0 : i32
    %c0_i32_0 = arith.constant 0 : i32
    return %arg0, %c0_i32 : i32, i32
  }
  func.func @transform_1(%arg0: i32) -> (i32, i32) {
    %c0_i32 = arith.constant 0 : i32
    %c0_i32_0 = arith.constant 0 : i32
    return %arg0, %c0_i32 : i32, i32
  }
  func.func @transform_2(%arg0: i32) -> (i32, i32) {
    %c0_i32 = arith.constant 0 : i32
    %c0_i32_0 = arith.constant 0 : i32
    return %arg0, %c0_i32 : i32, i32
  }
  func.func @transform_3(%arg0: i32) -> (i32, i32) {
    %c0_i32 = arith.constant 0 : i32
    %c0_i32_0 = arith.constant 0 : i32
    return %arg0, %c0_i32 : i32, i32
  }
  func.func @transform_4(%arg0: i32) -> (i32, i32) {
    %c0_i32 = arith.constant 0 : i32
    %c0_i32_0 = arith.constant 0 : i32
    %c0_i32_1 = arith.constant 0 : i32
    return %c0_i32, %c0_i32_0 : i32, i32
  }
  func.func @transform_5(%arg0: i32) -> (i32, i32) {
    %c0_i32 = arith.constant 0 : i32
    %c0_i32_0 = arith.constant 0 : i32
    %c0_i32_1 = arith.constant 0 : i32
    return %c0_i32, %c0_i32_0 : i32, i32
  }
  func.func @transform_6(%arg0: i32) -> (i32, i32) {
    %c0_i32 = arith.constant 0 : i32
    %c0_i32_0 = arith.constant 0 : i32
    %c0_i32_1 = arith.constant 0 : i32
    return %c0_i32, %c0_i32_0 : i32, i32
  }
  func.func @transform_7(%arg0: i32) -> (i32, i32) {
    %c0_i32 = arith.constant 0 : i32
    %c0_i32_0 = arith.constant 0 : i32
    %c0_i32_1 = arith.constant 0 : i32
    return %c0_i32, %c0_i32_0 : i32, i32
  }
  func.func @transform_8(%arg0: i32) -> (i32, i32) {
    %c0_i32 = arith.constant 0 : i32
    %c0_i32_0 = arith.constant 0 : i32
    %c0_i32_1 = arith.constant 0 : i32
    return %c0_i32, %c0_i32_0 : i32, i32
  }
  func.func @transform_9(%arg0: i32) -> (i32, i32) {
    %c0_i32 = arith.constant 0 : i32
    %c0_i32_0 = arith.constant 0 : i32
    %c0_i32_1 = arith.constant 0 : i32
    return %c0_i32, %c0_i32_0 : i32, i32
  }
  func.func @transform_10(%arg0: i32) -> (i32, i32) {
    %c0_i32 = arith.constant 0 : i32
    %c0_i32_0 = arith.constant 0 : i32
    %c0_i32_1 = arith.constant 0 : i32
    return %c0_i32, %c0_i32_0 : i32, i32
  }
  func.func @transform_11(%arg0: i32) -> (i32, i32) {
    %c0_i32 = arith.constant 0 : i32
    %c0_i32_0 = arith.constant 0 : i32
    %c0_i32_1 = arith.constant 0 : i32
    return %c0_i32, %c0_i32_0 : i32, i32
  }
  func.func @transform_12(%arg0: i32) -> (i32, i32) {
    %c0_i32 = arith.constant 0 : i32
    %c0_i32_0 = arith.constant 0 : i32
    return %arg0, %c0_i32 : i32, i32
  }
}

</mosaic_0001>

<bundles_post_ra>
// kernel: net_modif_time_forward.1
= control target key start
LH: loop header
LB: loop body
LE: loop exit
PB: predicated region body
PF: predicated region fallthrough
CT: control target
= control target key end

     0   :  { %v272_v0 = vmov 1   ;;  %v273_v15 = vmov 0   ;;  %vm100_vm4 = vcmask 261120   ;;  %vm207_vm13 = vcmask 523264   ;;  %s432_s3 = inlined_call_operand.vmem [shape: f32[8,2], index: 3, kind: input, shape index: {}]   ;;  %s433_s4 = inlined_call_operand.vmem [shape: f32[1,32], index: 4, kind: input, shape index: {}]   ;;  %s434_s5 = inlined_call_operand.vmem [shape: f32[1,32], index: 5, kind: input, shape index: {}]   ;;  %s435_s7 = inlined_call_operand.vmem [shape: f32[1,128], index: 7, kind: input, shape index: {}]   ;;  %s436_s6 = inlined_call_operand.vmem [shape: f32[32,128], index: 6, kind: input, shape index: {}]   ;;  %s437_s0 = inlined_call_operand.vmem [shape: bf16[8,32], index: 0, kind: input, shape index: {}]   ;;  %s438_s1 = inlined_call_operand.vmem [shape: bf16[8,32], index: 1, kind: input, shape index: {}]   ;;  %s439_s2 = inlined_call_operand.vmem [shape: bf16[8,32], index: 2, kind: input, shape index: {}]   ;;  %s440_s9 = inlined_call_operand.vmem [shape: f32[1,64], index: 9, kind: input, shape index: {}]   ;;  %s441_s8 = inlined_call_operand.vmem [shape: f32[128,64], index: 8, kind: input, shape index: {}]   ;;  %s442_s10 = inlined_call_operand.vmem [shape: f32[1,64], index: 10, kind: input, shape index: {}]   ;;  %s443_s11 = inlined_call_operand.<no memory space> [shape: f32[1,1], index: 11, kind: input, shape index: {}]   ;;  %s444_s12 = inlined_call_operand.vmem [shape: f32[8,1], index: 12, kind: output, shape index: {}]  }
   0x1   :  { %248 = vset.pattern.permute.xlu0 %v272_v0  ;;  %v43_v1 = vld [vmem:[%s432_s3] sm:$0xff]  ;;  %v95_v16 = vld [vmem:[%s436_s6 + $0x18] sm:$0xff]  ;;  %v94_v17 = vld [vmem:[%s436_s6 + $0x10] sm:$0xff] }
   0x2   :  { %v241_v2 = vmul.f32 -1.442695, %v43_v1  ;;  %116 = vmatpush.msra.mxu0 %v95_v16  ;;  %v93_v18 = vld [vmem:[%s436_s6 + $0x8] sm:$0xff]  ;;  %v92_v19 = vld [vmem:[%s436_s6] sm:$0xff]  ;;  %v158_v36 = vld [vmem:[%s441_s8 + $0x78] sm:$0xff] }
   0x3   :  { %v250_v20 = vld [vmem:[%s433_s4] ss:$0 sm:$0xff]  ;;  %163 = vmatpush.msra.mxu1 %v158_v36  ;;  %v157_v37 = vld [vmem:[%s441_s8 + $0x70] sm:$0xff]  ;;  %v156_v38 = vld [vmem:[%s441_s8 + $0x68] sm:$0xff] }
   0x4   :  { %256 = vpow2.f32 %v241_v2  ;;  %117 = vmatpush.msra.mxu0 %v94_v17  ;;  %v78_v21 = vld [vmem:[%s437_s0] sm:$0xf]  ;;  %v154_v40 = vld [vmem:[%s441_s8 + $0x58] sm:$0xff]  ;;  %v153_v41 = vld [vmem:[%s441_s8 + $0x50] sm:$0xff] }
   0x5   :  { %v251_v22 = vld [vmem:[%s434_s5] ss:$0 sm:$0xff]  ;;  %v79_v26 = vunpack.c.l.bf16 %v78_v21  ;;  %164 = vmatpush.msra.mxu1 %v157_v37  ;;  %v152_v42 = vld [vmem:[%s441_s8 + $0x48] sm:$0xff]  ;;  %v150_v44 = vld [vmem:[%s441_s8 + $0x38] sm:$0xff] }
   0x6   :  { %118 = vmatpush.msra.mxu0 %v93_v18  ;;  %v80_v24 = vld [vmem:[%s438_s1] sm:$0xf]  ;;  %v149_v45 = vld [vmem:[%s441_s8 + $0x30] sm:$0xff]  ;;  %v148_v46 = vld [vmem:[%s441_s8 + $0x28] sm:$0xff] }
   0x7   :  { %v81_v28 = vunpack.c.l.bf16 %v80_v24  ;;  %v82_v29 = vld [vmem:[%s439_s2] sm:$0xf]  ;;  %165 = vmatpush.msra.mxu1 %v156_v38  ;;  %v146_v48 = vld [vmem:[%s441_s8 + $0x18] sm:$0xff]  ;;  %v145_v49 = vld [vmem:[%s441_s8 + $0x10] sm:$0xff] }
   0x8   :  { %119 = vmatpush.msra.mxu0 %v92_v19  ;;  %v83_v32 = vunpack.c.l.bf16 %v82_v29  ;;  %v155_v39 = vld [vmem:[%s441_s8 + $0x60] sm:$0xff]  ;;  %v144_v50 = vld [vmem:[%s441_s8 + $0x8] sm:$0xff] }
   0x9   :  { %166 = vmatpush.msra.mxu1 %v155_v39  ;;  %v151_v43 = vld [vmem:[%s441_s8 + $0x40] sm:$0xff] }
   0xa   :  { %v257_v3 = vpop.eup %256  ;;  %v147_v47 = vld [vmem:[%s441_s8 + $0x20] sm:$0xff] }
   0xb   :  { %v47_v4 = vadd.f32 1.0, %v257_v3  ;;  %167 = vmatpush.msra.mxu1 %v154_v40  ;;  %v143_v51 = vld [vmem:[%s441_s8] sm:$0xff] }
   0xc   :  { %v252_v52 = vld [vmem:[%s435_s7] ss:$0 sm:$0xff] }
   0xd   :  { %258 = vrcp.f32 %v47_v4  ;;  %v59_v7 = vand.u32 2147483648, %v47_v4  ;;  %vm53_vm0 = vweird.f32 %v47_v4  ;;  %v57_v9 = vand.u32 2147483647, %v47_v4  ;;  %168 = vmatpush.msra.mxu1 %v153_v41  ;;  %v254_v18 = vld [vmem:[%s442_s10] ss:$0 sm:$0xff] }
   0xf   :  { %v60_v11 = vor.u32 1.1754944e-38, %v59_v7  ;;  %vm58_vm3 = vcmp.eq.f32.partialorder %v57_v9, 8.507059e+37  ;;  %169 = vmatpush.msra.mxu1 %v152_v42  ;;  %v17_v7 = vstv %s443_s11 }
  0x10   :  { %18 = vst [vmem:[#allocation2] sm:$0x1] %v17_v7 }
  0x11   :  { %170 = vmatpush.msra.mxu1 %v151_v43 }
  0x13   :  { %v259_v5 = vpop.eup %258  ;;  %171 = vmatpush.msra.mxu1 %v150_v44 }
  0x14   :  { %v49_v6 = vmul.f32 %v259_v5, %v47_v4  ;;  %vm54_vm1 = vweird.f32 %v259_v5  ;;  %v253_v4 = vld [vmem:[%s440_s9] ss:$0 sm:$0xff] }
  0x15   :  { %vm55_vm2 = vmor %vm53_vm0, %vm54_vm1  ;;  %172 = vmatpush.msra.mxu1 %v149_v45  ;;  %vm235_vm0 = vcmask 7168  }
  0x16   :  { %v50_v8 = vsub.f32 1.0, %v49_v6 }
  0x17   :  { %173 = vmatpush.msra.mxu1 %v148_v46  ;;  %v255_v24 = vld [vmem:[#allocation2] ss:$0 sm:$0xff] }
  0x18   :  { %v51_v10 = vmul.f32 %v259_v5, %v50_v8 }
  0x19   :  { %174 = vmatpush.msra.mxu1 %v147_v47 }
  0x1a   :  { %v52_v12 = vadd.f32 %v259_v5, %v51_v10 }
  0x1b   :  { %175 = vmatpush.msra.mxu1 %v146_v48 }
  0x1c   :  { %v56_v13 = vsel %vm55_vm2, %v259_v5, %v52_v12 }
  0x1d   :  { %v61_v14 = vsel %vm58_vm3, %v60_v11, %v56_v13  ;;  %176 = vmatpush.msra.mxu1 %v145_v49 }
  0x1e   :  { %66 = vperm.xlu0 %248, %v61_v14  }
  0x1f   :  { %177 = vmatpush.msra.mxu1 %v144_v50 }
  0x21   :  { %178 = vmatpush.msra.mxu1 %v143_v51 }
  0x26   :  { %249 = vset.pattern.permute.xlu0 %v273_v15 }
  0x27   :  { %87 = vperm.xlu0 %249, %v61_v14  }
  0x90   :  { %v67_v23 = vpop.permute.xlu0 %66 }
  0x91   :  { %v72_v25 = vmul.f32 %v250_v20, %v67_v23 }
  0x93   :  { %v77_v27 = vadd.f32 %v251_v22, %v72_v25 }
  0x95   :  { %v84_v30 = vsub.f32 %v79_v26, %v77_v27 }
  0x97   :  { %v85_v31 = vsub.f32 %v84_v30, %v81_v28 }
  0x99   :  { %v88_v33 = vpop.permute.xlu0 %87 }
  0x9a   :  { %v90_v34 = vmul.f32 %v88_v33, %v85_v31 }
  0x9c   :  { %v91_v35 = vmul.f32 %v90_v34, %v83_v32 }
  0x9e   :  { %242 = vmatmul.msk.f32.vlgmr.msra.gmra.mxu0 %vm100_vm4, %v91_v35 }
 0x11b   :  { %v121_v53 = vpop.f32.mrf.mxu0 }
 0x11c   :  { %v122_v54 = vadd.f32 %v252_v52, %v121_v53 }
 0x11e   :  { %v243_v55 = vmul.f32 -1.442695, %v122_v54 }
 0x120   :  { %260 = vpow2.f32 %v243_v55 }
 0x126   :  { %v261_v56 = vpop.eup %260 }
 0x127   :  { %v127_v57 = vadd.f32 1.0, %v261_v56 }
 0x129   :  { %262 = vrcp.f32 %v127_v57  ;;  %v139_v61 = vand.u32 2147483648, %v127_v57  ;;  %v137_v63 = vand.u32 2147483647, %v127_v57  ;;  %vm133_vm6 = vweird.f32 %v127_v57 }
 0x12b   :  { %v140_v1 = vor.u32 1.1754944e-38, %v139_v61  ;;  %vm138_vm8 = vcmp.eq.f32.partialorder %v137_v63, 8.507059e+37 }
 0x12f   :  { %v263_v58 = vpop.eup %262 }
 0x130   :  { %v129_v59 = vmul.f32 %v263_v58, %v127_v57  ;;  %vm134_vm5 = vweird.f32 %v263_v58 }
 0x131   :  { %vm135_vm7 = vmor %vm133_vm6, %vm134_vm5 }
 0x132   :  { %v130_v60 = vsub.f32 1.0, %v129_v59 }
 0x134   :  { %v131_v62 = vmul.f32 %v263_v58, %v130_v60 }
 0x136   :  { %v132_v0 = vadd.f32 %v263_v58, %v131_v62 }
 0x138   :  { %v136_v2 = vsel %vm135_vm7, %v263_v58, %v132_v0 }
 0x139   :  { %v141_v3 = vsel %vm138_vm8, %v140_v1, %v136_v2 }
 0x13a   :  { %179 = vmatmul.f32.vlgmr.msra.gmra.mxu1 %v141_v3 }
 0x1b7   :  { %v180_v5 = vpop.f32.mrf.mxu1 }
 0x1b8   :  { %v181_v6 = vadd.f32 %v253_v4, %v180_v5 }
 0x1ba   :  { %v244_v8 = vmul.f32 -1.442695, %v181_v6 }
 0x1bc   :  { %264 = vpow2.f32 %v244_v8 }
 0x1c2   :  { %v265_v9 = vpop.eup %264 }
 0x1c3   :  { %v186_v10 = vadd.f32 1.0, %v265_v9 }
 0x1c5   :  { %266 = vrcp.f32 %v186_v10  ;;  %v198_v14 = vand.u32 2147483648, %v186_v10  ;;  %v196_v16 = vand.u32 2147483647, %v186_v10  ;;  %vm192_vm10 = vweird.f32 %v186_v10 }
 0x1c7   :  { %v199_v19 = vor.u32 1.1754944e-38, %v198_v14  ;;  %vm197_vm12 = vcmp.eq.f32.partialorder %v196_v16, 8.507059e+37 }
 0x1cb   :  { %v267_v11 = vpop.eup %266 }
 0x1cc   :  { %v188_v12 = vmul.f32 %v267_v11, %v186_v10  ;;  %vm193_vm9 = vweird.f32 %v267_v11 }
 0x1cd   :  { %vm194_vm11 = vmor %vm192_vm10, %vm193_vm9 }
 0x1ce   :  { %v189_v13 = vsub.f32 1.0, %v188_v12 }
 0x1d0   :  { %v190_v15 = vmul.f32 %v267_v11, %v189_v13 }
 0x1d2   :  { %v191_v17 = vadd.f32 %v267_v11, %v190_v15 }
 0x1d4   :  { %v195_v20 = vsel %vm194_vm11, %v267_v11, %v191_v17 }
 0x1d5   :  { %v200_v21 = vsel %vm197_vm12, %v199_v19, %v195_v20 }
 0x1d6   :  { %v206_v22 = vmul.f32 %v254_v18, %v200_v21 }
 0x1d8   :  { %v208_v23 = vsel %vm207_vm13, %v206_v22, 0.0 }
 0x1d9   :  { %209 = vadd.xlane.f32.xlu1 %v208_v23 }
 0x24c   :  { %v210_v25 = vpop.xlane.xlu1 %209 }
 0x24d   :  { %v215_v26 = vadd.f32 %v255_v24, %v210_v25 }
 0x24f   :  { %v245_v27 = vmul.f32 -1.442695, %v215_v26 }
 0x251   :  { %268 = vpow2.f32 %v245_v27 }
 0x257   :  { %v269_v28 = vpop.eup %268 }
 0x258   :  { %v219_v29 = vadd.f32 1.0, %v269_v28 }
 0x25a   :  { %270 = vrcp.f32 %v219_v29  ;;  %v231_v33 = vand.u32 2147483648, %v219_v29  ;;  %v229_v35 = vand.u32 2147483647, %v219_v29  ;;  %vm225_vm15 = vweird.f32 %v219_v29 }
 0x25c   :  { %v232_v37 = vor.u32 1.1754944e-38, %v231_v33  ;;  %vm230_vm2 = vcmp.eq.f32.partialorder %v229_v35, 8.507059e+37 }
 0x260   :  { %v271_v30 = vpop.eup %270 }
 0x261   :  { %v221_v31 = vmul.f32 %v271_v30, %v219_v29  ;;  %vm226_vm14 = vweird.f32 %v271_v30 }
 0x262   :  { %vm227_vm1 = vmor %vm225_vm15, %vm226_vm14 }
 0x263   :  { %v222_v32 = vsub.f32 1.0, %v221_v31 }
 0x265   :  { %v223_v34 = vmul.f32 %v271_v30, %v222_v32 }
 0x267   :  { %v224_v36 = vadd.f32 %v271_v30, %v223_v34 }
 0x269   :  { %v228_v38 = vsel %vm227_vm1, %v271_v30, %v224_v36 }
 0x26a   :  { %v233_v39 = vsel %vm230_vm2, %v232_v37, %v228_v38 }
 0x26b   :  { %236 = vst.msk [vmem:[%s444_s12] sm:$0xff] %vm235_vm0, %v233_v39 }

</bundles_post_ra>
